<compile_context>
chip_gen: v5e
topology: v5e:2x2
jax: 0.10.0
libtpu: 0.0.40
codegen_flags: <defaults>
</compile_context>

<pallas_src>
import functools

import jax
import jax.numpy as jnp
from jax.experimental import pallas as pl
from jax.experimental.pallas import tpu as pltpu


def _round_up(x, m):
    return (x + m - 1) // m * m


def _patch_embed_kernel(patches_ref, w_ref, pos_ref, o_ref):
    # patches_ref: [TN, Kp] bf16   (row 0 of the sequence is an all-zero "cls patch")
    # w_ref:       [Kp, Ep] bf16   (grid-invariant)
    # pos_ref:     [TN, Ep] f32    (cls+pos row 0, positions[1:]+conv_bias after)
    # o_ref:       [TN, Ep] f32
    proj = jnp.dot(patches_ref[...], w_ref[...],
                   preferred_element_type=jnp.float32)          # MXU, f32 acc
    o_ref[...] = (proj + pos_ref[...]).astype(o_ref.dtype)


def patch_embedding(x, conv_w, conv_b, cls_token, positions, *, patch_size):
    """x: [B, C, H, W] float32. Returns [B, N+1, E] float32."""
    B, C, H, W = x.shape
    p = patch_size
    assert H % p == 0 and W % p == 0, "image size must be divisible by patch size"
    hp, wp = H // p, W // p
    N = hp * wp                     # number of patches
    S = N + 1                       # sequence length incl. cls token
    E = conv_w.shape[0]
    K = C * p * p

    # Lane-dense padding: last dims of MXU operands / output to multiples of 128.
    Kp = _round_up(K, 128)
    Ep = _round_up(E, 128)
    # Sequence tile: multiple of 16 (bf16 sublane packing), capped to bound
    # per-step VMEM for large N on v7x (64 MiB physical / 32 MiB scoped).
    TN = min(512, _round_up(S, 16))
    Sp = _round_up(S, TN)

    # --- patchify (stride==kernel Conv2d -> unfold); row 0 is a zero "cls
    #     patch" so the cls token falls out of the same matmul+add.  The whole
    #     chain is fused into the input DMA via allow_input_fusion. ---
    patches = x.reshape(B, C, hp, p, wp, p)
    patches = patches.transpose(0, 2, 4, 1, 3, 5).reshape(B, N, K)
    patches = jnp.pad(patches, ((0, 0), (1, Sp - S), (0, Kp - K)))
    patches = patches.astype(jnp.bfloat16)

    # Conv weight [E, C, p, p] -> [K, E], zero-padded, bf16.
    w_mat = conv_w.reshape(E, K).T
    w_mat = jnp.pad(w_mat, ((0, Kp - K), (0, Ep - E))).astype(jnp.bfloat16)

    # Effective positional table (grid-invariant):
    #   row 0          = cls_token + positions[0]          (zero patch -> proj 0)
    #   rows 1..N      = positions[1:] + conv_bias
    cls_row = cls_token.reshape(1, E) + positions[0:1, :]
    patch_rows = positions[1:, :] + conv_b[None, :]
    pos_eff = jnp.concatenate([cls_row, patch_rows], axis=0)          # [S, E]
    pos_eff = jnp.pad(pos_eff, ((0, Sp - S), (0, Ep - E)))

    grid = (B, Sp // TN)
    out_padded = pl.pallas_call(
        _patch_embed_kernel,
        out_shape=jax.ShapeDtypeStruct((B, Sp, Ep), jnp.float32),
        grid=grid,
        in_specs=[
            pl.BlockSpec((None, TN, Kp), lambda b, n: (b, n, 0)),   # patches
            pl.BlockSpec((Kp, Ep), lambda b, n: (0, 0)),            # weight
            pl.BlockSpec((TN, Ep), lambda b, n: (n, 0)),            # pos (+cls,+bias)
        ],
        out_specs=pl.BlockSpec((None, TN, Ep), lambda b, n: (b, n, 0)),
        compiler_params=pltpu.CompilerParams(
            dimension_semantics=("parallel", "parallel"),
            allow_input_fusion=[True, False, False],
        ),
    )(patches, w_mat, pos_eff)

    return out_padded[:, :S, :E]


def reference(x, conv_w, conv_b, cls_token, positions, *, patch_size):
    """Pure-JAX f32 reference of the PyTorch forward."""
    p = patch_size
    proj = jax.lax.conv_general_dilated(
        x, conv_w, window_strides=(p, p), padding="VALID",
        dimension_numbers=("NCHW", "OIHW", "NCHW"))
    proj = proj + conv_b.reshape(1, -1, 1, 1)
    B_, E, hp, wp = proj.shape
    proj = proj.reshape(B_, E, hp * wp).transpose(0, 2, 1)      # b (h w) e
    cls = jnp.broadcast_to(cls_token, (B_, 1, E))
    out = jnp.concatenate([cls, proj], axis=1)
    return out + positions[None, :, :]


if __name__ == "__main__":
    # Small, module-consistent shapes:
    #   in_channels=4, patch_size=4, emb_size=32, img_size=16 -> N=16, seq=17
    B, C, img_size, patch_size, E = 2, 4, 16, 4, 32
    N = (img_size // patch_size) ** 2

    key = jax.random.PRNGKey(0)
    kx, kw, kb, kc, kp = jax.random.split(key, 5)

    x = jax.random.normal(kx, (B, C, img_size, img_size), dtype=jnp.float32)
    conv_w = jax.random.normal(kw, (E, C, patch_size, patch_size),
                               dtype=jnp.float32) * 0.05
    conv_b = jax.random.normal(kb, (E,), dtype=jnp.float32) * 0.05
    cls_token = jax.random.normal(kc, (1, 1, E), dtype=jnp.float32)
    positions = jax.random.normal(kp, (N + 1, E), dtype=jnp.float32)

    fn = jax.jit(functools.partial(patch_embedding, patch_size=patch_size))
    out = fn(x, conv_w, conv_b, cls_token, positions)
    out = jax.block_until_ready(out)

    ref = reference(x, conv_w, conv_b, cls_token, positions,
                    patch_size=patch_size)
    assert out.shape == (B, N + 1, E), out.shape
    # bf16 matmul inputs (f32 accumulation) -> looser tolerance vs f32 reference.
    assert jnp.allclose(out, ref, atol=2e-2, rtol=2e-2), "mismatch vs reference"

    print("KERNEL_OK")
</pallas_src>

<mosaic_0001>
module attributes {stable_mosaic.version = 11 : i64} {
  func.func @_patch_embed_kernel(%arg0: i32, %arg1: i32, %arg2: memref<1x32x128xbf16, #tpu.memory_space<vmem>>, %arg3: memref<128x128xbf16, #tpu.memory_space<vmem>>, %arg4: memref<32x128xf32, #tpu.memory_space<vmem>>, %arg5: memref<1x32x128xf32, #tpu.memory_space<vmem>>) attributes {dimension_semantics = [#tpu.dimension_semantics<parallel>, #tpu.dimension_semantics<parallel>], iteration_bounds = array<i64: 2, 1>, scalar_prefetch = 0 : i64, scratch_operands = 0 : i64, tpu.core_type = #tpu.core_type<tc>, window_params = [{transform_indices = @transform_0, window_bounds = array<i64: 1, 32, 128>}, {pipeline_mode = #tpu.pipeline_mode<synchronous>, transform_indices = @transform_1, window_bounds = array<i64: 128, 128>}, {transform_indices = @transform_2, window_bounds = array<i64: 32, 128>}, {transform_indices = @transform_3, window_bounds = array<i64: 1, 32, 128>}]} {
    %c0 = arith.constant 0 : index
    %c0_0 = arith.constant 0 : index
    %c0_1 = arith.constant 0 : index
    %0 = vector.load %arg2[%c0, %c0_0, %c0_1] : memref<1x32x128xbf16, #tpu.memory_space<vmem>>, vector<1x32x128xbf16>
    %1 = vector.shape_cast %0 : vector<1x32x128xbf16> to vector<32x128xbf16>
    %c0_2 = arith.constant 0 : index
    %c0_3 = arith.constant 0 : index
    %2 = vector.load %arg3[%c0_2, %c0_3] : memref<128x128xbf16, #tpu.memory_space<vmem>>, vector<128x128xbf16>
    %cst = arith.constant dense<0.000000e+00> : vector<32x128xf32>
    %3 = tpu.matmul %1, %2, %cst {dimension_numbers = #tpu.dot_dimension_numbers<[1], [0], [0], [1], [0, 0, 1, 1], [], []>} : vector<32x128xbf16>, vector<128x128xbf16>, vector<32x128xf32> -> vector<32x128xf32>
    %c0_4 = arith.constant 0 : index
    %c0_5 = arith.constant 0 : index
    %4 = vector.load %arg4[%c0_4, %c0_5] : memref<32x128xf32, #tpu.memory_space<vmem>>, vector<32x128xf32>
    %5 = arith.addf %3, %4 : vector<32x128xf32>
    %c0_6 = arith.constant 0 : index
    %c0_7 = arith.constant 0 : index
    %c0_8 = arith.constant 0 : index
    %6 = vector.load %arg5[%c0_6, %c0_7, %c0_8] : memref<1x32x128xf32, #tpu.memory_space<vmem>>, vector<1x32x128xf32>
    %7 = vector.shape_cast %6 : vector<1x32x128xf32> to vector<32x128xf32>
    %8 = vector.shape_cast %5 : vector<32x128xf32> to vector<1x32x128xf32>
    tpu.vector_store %arg5[%c0_6, %c0_7, %c0_8], %8 {strides = array<i32>} : memref<1x32x128xf32, #tpu.memory_space<vmem>>, vector<1x32x128xf32>,
    return
  }
  func.func @transform_0(%arg0: i32, %arg1: i32) -> (i32, i32, i32) {
    %c0_i32 = arith.constant 0 : i32
    %c0_i32_0 = arith.constant 0 : i32
    return %arg0, %arg1, %c0_i32 : i32, i32, i32
  }
  func.func @transform_1(%arg0: i32, %arg1: i32) -> (i32, i32) {
    %c0_i32 = arith.constant 0 : i32
    %c0_i32_0 = arith.constant 0 : i32
    %c0_i32_1 = arith.constant 0 : i32
    return %c0_i32, %c0_i32_0 : i32, i32
  }
  func.func @transform_2(%arg0: i32, %arg1: i32) -> (i32, i32) {
    %c0_i32 = arith.constant 0 : i32
    %c0_i32_0 = arith.constant 0 : i32
    return %arg1, %c0_i32 : i32, i32
  }
  func.func @transform_3(%arg0: i32, %arg1: i32) -> (i32, i32, i32) {
    %c0_i32 = arith.constant 0 : i32
    %c0_i32_0 = arith.constant 0 : i32
    return %arg0, %arg1, %c0_i32 : i32, i32, i32
  }
}

</mosaic_0001>

<bundles_post_ra>
// kernel: patch_embedding.2
= control target key start
LH: loop header
LB: loop body
LE: loop exit
PB: predicated region body
PF: predicated region fallthrough
CT: control target
= control target key end

     0   :  { %s754_s17 = smov 0   ;;  %s756_s18 = smov 0   ;;  %s832_s0 = inlined_call_operand.vmem [shape: bf16[128,128], index: 0, kind: input, shape index: {}]   ;;  %s833_s1 = inlined_call_operand.vmem [shape: f32[32,128], index: 1, kind: input, shape index: {}]   ;;  %s834_s2 = inlined_call_operand.vmem [shape: bf16[2,16,64], index: 2, kind: input, shape index: {}]   ;;  %s835_s3 = inlined_call_operand.<no memory space> [shape: bf16[], index: 3, kind: input, shape index: {}]   ;;  %s836_s4 = inlined_call_operand.vmem [shape: f32[2,32,128], index: 4, kind: output, shape index: {}]  }
   0x1   :  { %v9_v0 = vstv %s835_s3  ;;  %s758_s19 = smov 0  }
   0x2   :  { %v752_v1 = vunpack.i.l.bf16 %v9_v0 }
   0x3 LB: > { %s31_s3 = sadd.s32 1, %s718_s18  ;;  %p603_p0 = scmp.ge.s32.totalorder %s722_s19, 1  ;;  %s722_s19 = sphi %s758_s19, %s19_s19   ;;  %s718_s18 = sphi %s756_s18, %s838_s18   ;;  %s714_s17 = sphi %s754_s17, %s837_s17  }
   0x4   : > { %p33_p1 = scmp.ge.s32.totalorder %s31_s3, 2  ;;  %p188_p2 = scmp.lt.s32.totalorder %s722_s19, 3 }
   0x6   : > { %s840_s3 = smov (%p33_p1, %s31_s3), 0  ;;  %p189_p3 = pnand %p603_p0, %p188_p2 }
   0x8   : > { %192 = sbr.rel (%p189_p3) target bundleno = 183 (0xb7), region = 32 }
   0xd   : > { %v662_v2 = vld [vmem:[%s832_s0 + $0x38] sm:$0xff]  ;;  %p239_p4 = scmp.lt.s32.totalorder %s714_s17, 1  ;;  %v325_v3 = vlaneseq  ;;  %v661_v4 = vld [vmem:[%s832_s0 + $0x30] sm:$0xff]  ;;  %v660_v6 = vld [vmem:[%s832_s0 + $0x28] sm:$0xff]  ;;  %vm330_vm1 = vcmask 1046528  }
   0xe   : > { %473 = vmatpush.bf16.msra.mxu0 %v662_v2  ;;  %668 = vmatpush.bf16.msra.mxu1 %v662_v2  ;;  %v659_v10 = vld [vmem:[%s832_s0 + $0x20] sm:$0xff]  ;;  %v658_v19 = vld [vmem:[%s832_s0 + $0x18] sm:$0xff]  ;;  %v657_v23 = vld [vmem:[%s832_s0 + $0x10] sm:$0xff] }
   0xf   : > { %s842_s17 = smov (!%p239_p4, %s714_s17), 1  ;;  %v326_v5 = vand.u32 127, %v325_v3  ;;  %v656_v24 = vld [vmem:[%s832_s0 + $0x8] sm:$0xff]  ;;  %v655_v25 = vld [vmem:[%s832_s0] sm:$0xff]  ;;  %v411_v29 = vld [vmem:[%s833_s1 + $0x10] sm:$0xff] }
  0x10   : > { %s604_s24 = sshll.u32 %s842_s17, 1  ;;  %s652_s16 = sshll.u32 %s842_s17, 5  ;;  %v409_v28 = vld [vmem:[%s833_s1] sm:$0xff]  ;;  %v410_v34 = vld [vmem:[%s833_s1 + $0x8] sm:$0xff]  ;;  %v412_v35 = vld [vmem:[%s833_s1 + $0x18] sm:$0xff] }
  0x11   : > { %s245_s25 = sadd.s32 4294967295, %s604_s24  ;;  %vm328_vm0 = vcmp.lt.s32.totalorder %v326_v5, 64  ;;  %s269_s26 = scalar_lea.vmem %s836_s4, %s652_s16 }
  0x12   : > { %474 = vmatpush.bf16.msra.mxu0 %v661_v4  ;;  %669 = vmatpush.bf16.msra.mxu1 %v661_v4  ;;  %s605_s28 = sshll.u32 %s245_s25, 2 }
  0x13   : > { %s247_s5 = scalar_lea.vmem %s834_s2, %s605_s28 }
  0x14   : > { %v608_v7 = vld [vmem:[%s247_s5 + $0x4] sm:$0xff]  }
  0x15   : > { %v316_v8 = vunpack.c.l.bf16 %v608_v7  ;;  %v354_v9 = vunpack.c.h.bf16 %v608_v7 }
  0x16   : > { %475 = vmatpush.bf16.msra.mxu0 %v660_v6  ;;  %670 = vmatpush.bf16.msra.mxu1 %v660_v6 }
  0x17   : > { %v329_v11 = vsel %vm328_vm0, %v316_v8, %v752_v1  ;;  %v367_v12 = vsel %vm328_vm0, %v354_v9, %v752_v1 }
  0x18   : > { %v331_v13 = vsel %vm330_vm1, %v329_v11, %v752_v1  ;;  %v369_v14 = vsel %vm330_vm1, %v367_v12, %v329_v11  ;;  %v377_v15 = vsel %vm330_vm1, %v752_v1, %v367_v12 }
  0x19   : > { %v332_v16 = vrot.slane %v331_v13, 7  ;;  %v370_v17 = vrot.slane %v369_v14, 7  ;;  %v378_v18 = vrot.slane %v377_v15, 7 }
  0x1a   : > { %476 = vmatpush.bf16.msra.mxu0 %v659_v10  ;;  %671 = vmatpush.bf16.msra.mxu1 %v659_v10 }
  0x1b   : > { %v333_v20 = vpack.c.bf16 0.0, %v332_v16  ;;  %v372_v21 = vpack.c.bf16 0.0, %v370_v17  ;;  %v666_v22 = vpack.c.bf16 %v752_v1, %v378_v18 }
  0x1d   : > { %336 = vst [vmem:[#allocation7] sm:$0xf] %v333_v20 }
  0x1e   : > { %477 = vmatpush.bf16.msra.mxu0 %v658_v19  ;;  %672 = vmatpush.bf16.msra.mxu1 %v658_v19  ;;  %375 = vst [vmem:[#allocation7 + $0x4] sm:$0xf] %v372_v21 }
  0x1f   : > { %667 = vst [vmem:[#allocation7 + $0x8] sm:$0xff] %v666_v22  }
  0x22   : > { %478 = vmatpush.bf16.msra.mxu0 %v657_v23  ;;  %673 = vmatpush.bf16.msra.mxu1 %v657_v23 }
  0x25   : > { %v653_v26 = vld [vmem:[#allocation7] sm:$0xff] }
  0x26   : > { %479 = vmatpush.bf16.msra.mxu0 %v656_v24  ;;  %674 = vmatpush.bf16.msra.mxu1 %v656_v24  ;;  %v654_v27 = vld [vmem:[#allocation7 + $0x8] sm:$0xff] }
  0x2a   : > { %480 = vmatpush.bf16.msra.mxu0 %v655_v25  ;;  %675 = vmatpush.bf16.msra.mxu1 %v655_v25 }
  0x2d   : > { %481 = vmatmul.bf16.vlgmr.msra.gmra.mxu0 %v653_v26  ;;  %486 = vmatmul.bf16.vlgmr.msra.gmra.mxu1 %v654_v27 }
  0xaa   : > { %v482_v30 = vpop.f32.mrf.mxu0  ;;  %v487_v31 = vpop.f32.mrf.mxu1 }
  0xab   : > { %v483_v32 = vadd.f32 %v482_v30, %v409_v28  ;;  %v488_v33 = vadd.f32 %v487_v31, %v411_v29 }
  0xad   : > { %492 = vst [vmem:[%s269_s26] sm:$0xff] %v483_v32 }
  0xae   : > { %494 = vst [vmem:[%s269_s26 + $0x10] sm:$0xff] %v488_v33 }
  0xb2   : > { %v484_v36 = vpop.f32.mrf.mxu0  ;;  %v489_v37 = vpop.f32.mrf.mxu1 }
  0xb3   : > { %v485_v38 = vadd.f32 %v484_v36, %v410_v34  ;;  %v490_v39 = vadd.f32 %v489_v37, %v412_v35 }
  0xb5   : > { %493 = vst [vmem:[%s269_s26 + $0x8] sm:$0xff] %v485_v38 }
  0xb6   : > { %495 = vst [vmem:[%s269_s26 + $0x18] sm:$0xff] %v490_v39 }
  0xb7 PF: > { %s19_s19 = sadd.s32 1, %s722_s19   ;;  %s837_s17 = smov %s718_s18 }
  0xb8   : > { %p16_p5 = scmp.ge.s32.totalorder %s19_s19, 4   ;;  %s838_s18 = smov %s840_s3 }
  0xba   :  { %18 = sbr.rel (!%p16_p5) target bundleno = 3 (0x3), region = 70 }

</bundles_post_ra>
